<compile_context>
chip_gen: v7x
topology: tpu7x:2x2x1
jax: 0.10.0
libtpu: 0.0.40
codegen_flags: <defaults>
</compile_context>

<pallas_src>
import math
from functools import partial

import jax
import jax.numpy as jnp
from jax import lax
from jax.experimental import pallas as pl
from jax.experimental.pallas import tpu as pltpu


def _round_up(x, m):
    return ((x + m - 1) // m) * m


# ----------------------------------------------------------------------------
# Path 1: small table (VMEM-resident) -> chunked one-hot gather on the MXU.
# ----------------------------------------------------------------------------
def _embedding_onehot_kernel(ids_ref, table_ref, out_ref, *,
                             vocab, chunk, n_chunks, scale):
    """rows = one_hot(ids) @ table (vocab chunked), then scale.

    ids_ref   : VMEM (tm, 1) int32 token ids for this tile
    table_ref : VMEM (vocab_pad, d_model) embedding table (constant block)
    out_ref   : VMEM (tm, d_model) output tile
    """
    ids = jnp.clip(ids_ref[...], 0, vocab - 1)               # (tm, 1) int32
    tm = ids.shape[0]
    d_model = out_ref.shape[1]
    # One iota reused for every chunk; intermediates are (tm, chunk) only.
    iota = lax.broadcasted_iota(jnp.int32, (tm, chunk), 1)
    acc = jnp.zeros((tm, d_model), jnp.float32)
    for c in range(n_chunks):                                 # static unroll
        onehot = (iota == (ids - c * chunk)).astype(table_ref.dtype)
        acc = acc + jnp.dot(onehot, table_ref[pl.ds(c * chunk, chunk), :],
                            preferred_element_type=jnp.float32)
    out_ref[...] = (acc * scale).astype(out_ref.dtype)


def _onehot_pallas_call(ids2d, table_p, tm, scale, *, vocab, chunk):
    n_pad = ids2d.shape[0]
    vocab_p, d_model = table_p.shape
    n_chunks = vocab_p // chunk
    itemsize = table_p.dtype.itemsize
    # Explicit scoped-VMEM budget: table block (pipelined x2) + output blocks
    # (x2) + (tm, chunk) iota/one-hot + f32 accumulator + headroom.
    est = (2 * vocab_p * d_model * itemsize
           + 2 * tm * d_model * itemsize
           + tm * chunk * 8
           + tm * d_model * 4
           + 4 * 2**20)
    vmem_limit = int(min(max(est, 16 * 2**20), 64 * 2**20))
    return pl.pallas_call(
        partial(_embedding_onehot_kernel, vocab=vocab, chunk=chunk,
                n_chunks=n_chunks, scale=scale),
        out_shape=jax.ShapeDtypeStruct((n_pad, d_model), table_p.dtype),
        grid=(n_pad // tm,),
        in_specs=[
            pl.BlockSpec((tm, 1), lambda i: (i, 0)),
            pl.BlockSpec((vocab_p, d_model), lambda i: (0, 0)),
        ],
        out_specs=pl.BlockSpec((tm, d_model), lambda i: (i, 0)),
        compiler_params=pltpu.CompilerParams(
            dimension_semantics=("parallel",),
            vmem_limit_bytes=vmem_limit),
    )(ids2d, table_p)


# ----------------------------------------------------------------------------
# Path 2: large table (stays in HBM) -> per-row DMA gather straight into the
# output block, rolling window of DMA semaphores.
# ----------------------------------------------------------------------------
def _embedding_dma_gather_kernel(ids_ref, table_hbm, out_ref, copy_sems, *,
                                 tm, vocab, n_tok, scale, window):
    """Gather `tm` table rows from HBM directly into out_ref, then scale.

    ids_ref   : SMEM (n_pad,) int32 (scalar-prefetched token ids)
    table_hbm : HBM  (vocab, d_model) (memory_space=pl.ANY; never in VMEM)
    out_ref   : VMEM (tm, d_model) output tile (DMA landing buffer + result)
    copy_sems : DMA semaphores, rolling pool of `window`
    """
    base = pl.multiple_of(pl.program_id(0) * tm, tm)

    def row_copy(j):
        # Same descriptor is rebuilt for start() and wait() (identical src /
        # dst / sem), so the wait matches the issued copy exactly.
        tok = jnp.clip(ids_ref[base + j], 0, vocab - 1)       # bounds-safe
        return pltpu.make_async_copy(
            table_hbm.at[pl.ds(tok, 1), :],
            out_ref.at[pl.ds(j, 1), :],
            copy_sems.at[j % window],
        )

    def maybe_start(j):
        @pl.when(base + j < n_tok)            # skip DMAs for padded tokens
        def _():
            row_copy(j).start()

    def maybe_wait(j):
        @pl.when(base + j < n_tok)
        def _():
            row_copy(j).wait()

    def prologue(j, c):
        maybe_start(j)
        return c

    def steady(j, c):
        maybe_wait(j - window)                # free slot, then reuse it
        maybe_start(j)
        return c

    def drain(j, c):
        maybe_wait(j)
        return c

    lax.fori_loop(0, window, prologue, 0)     # fill the window
    lax.fori_loop(window, tm, steady, 0)      # rolling issue/wait overlap
    lax.fori_loop(tm - window, tm, drain, 0)  # drain remaining copies

    # Scale in place; padded rows hold stale data and are sliced off outside.
    out_ref[...] = (out_ref[...].astype(jnp.float32) * scale
                    ).astype(out_ref.dtype)
    # TODO(synk): overlap across grid steps (start tile i+1's row DMAs before
    # draining tile i via a 2-deep landing buffer) if this path is ever hot.


def _dma_gather_pallas_call(flat_ids, table, tm, scale, *, n_tok, window):
    n_pad = flat_ids.shape[0]
    vocab, d_model = table.shape
    itemsize = table.dtype.itemsize
    est = 2 * tm * d_model * itemsize + 4 * 2**20
    vmem_limit = int(min(max(est, 16 * 2**20), 64 * 2**20))
    return pl.pallas_call(
        partial(_embedding_dma_gather_kernel, tm=tm, vocab=vocab,
                n_tok=n_tok, scale=scale, window=window),
        out_shape=jax.ShapeDtypeStruct((n_pad, d_model), table.dtype),
        grid_spec=pltpu.PrefetchScalarGridSpec(
            num_scalar_prefetch=1,                          # ids land in SMEM
            grid=(n_pad // tm,),
            in_specs=[pl.BlockSpec(memory_space=pl.ANY)],   # table stays in HBM
            out_specs=pl.BlockSpec((tm, d_model), lambda i, ids: (i, 0)),
            scratch_shapes=[pltpu.SemaphoreType.DMA((window,))],
        ),
        compiler_params=pltpu.CompilerParams(
            dimension_semantics=("parallel",),
            vmem_limit_bytes=vmem_limit),
    )(flat_ids, table)


# ----------------------------------------------------------------------------
# Public wrapper
# ----------------------------------------------------------------------------
def embedding_forward(ids, table, *, tm_onehot=512, tm_gather=256,
                      vocab_chunk=1024, dma_window=16,
                      vmem_table_limit_bytes=2 * 1024 * 1024):
    """ids: (...,) int, table: (vocab, d_model) -> (..., d_model).

    Equivalent to `nn.Embedding(vocab, d_model)(ids) * sqrt(d_model)`;
    out-of-range ids are clamped to vocab-1 (PyTorch would raise).
    """
    vocab, d_model = table.shape
    lead_shape = ids.shape
    n_tok = 1
    for s in lead_shape:
        n_tok *= int(s)
    scale = float(math.sqrt(d_model))
    if n_tok == 0:
        return jnp.zeros(lead_shape + (d_model,), table.dtype)

    # TODO(synk): int64 ids with vocab >= 2**31 would truncate in this cast.
    flat = ids.reshape(n_tok).astype(jnp.int32)
    table_bytes = vocab * d_model * table.dtype.itemsize

    # Small tables ride the MXU one-hot gather; larger tables stay in HBM and
    # are row-gathered with DMAs.  (Tune threshold lower on v5e for f32 tables,
    # higher on v6e for bf16 tables.)
    small_table = table_bytes <= vmem_table_limit_bytes
    tile = tm_onehot if small_table else tm_gather
    tile = min(tile, _round_up(n_tok, 8))       # shrink tile for tiny inputs
    n_pad = _round_up(n_tok, tile)
    flat = jnp.pad(flat, (0, n_pad - n_tok))    # pad with id 0; sliced off

    if small_table:
        chunk = min(vocab_chunk, _round_up(vocab, 8))
        vocab_p = _round_up(vocab, chunk)
        table_p = (table if vocab_p == vocab
                   else jnp.pad(table, ((0, vocab_p - vocab), (0, 0))))
        ids2d = flat.reshape(n_pad, 1)
        out_flat = _onehot_pallas_call(ids2d, table_p, tile, scale,
                                       vocab=vocab, chunk=chunk)
    else:
        window = max(1, min(dma_window, tile))
        out_flat = _dma_gather_pallas_call(flat, table, tile, scale,
                                           n_tok=n_tok, window=window)

    return out_flat[:n_tok].reshape(lead_shape + (d_model,))


if __name__ == "__main__":
    key = jax.random.PRNGKey(0)
    k_tab, k_ids, k_tab2, k_ids2 = jax.random.split(key, 4)

    B, S, d_model = 2, 8, 128

    # --- Path 1: small table -> VMEM-resident one-hot MXU gather ------------
    vocab = 64
    table = jax.random.normal(k_tab, (vocab, d_model), dtype=jnp.float32)
    ids = jax.random.randint(k_ids, (B, S), 0, vocab, dtype=jnp.int32)
    out = jax.block_until_ready(embedding_forward(ids, table))
    ref = jnp.take(table, ids, axis=0) * math.sqrt(d_model)
    assert out.shape == (B, S, d_model) and out.dtype == table.dtype
    assert jnp.allclose(out, ref, atol=5e-3, rtol=5e-3), \
        float(jnp.max(jnp.abs(out - ref)))

    # --- Path 2: large table -> HBM-resident DMA row gather -----------------
    vocab2 = 8192                  # 8192 * 128 * 4 B = 4 MiB > 2 MiB threshold
    table2 = jax.random.normal(k_tab2, (vocab2, d_model), dtype=jnp.float32)
    ids2 = jax.random.randint(k_ids2, (B, S), 0, vocab2, dtype=jnp.int32)
    out2 = jax.block_until_ready(embedding_forward(ids2, table2))
    ref2 = jnp.take(table2, ids2, axis=0) * math.sqrt(d_model)
    assert out2.shape == (B, S, d_model) and out2.dtype == table2.dtype
    assert jnp.allclose(out2, ref2, atol=1e-5, rtol=1e-5), \
        float(jnp.max(jnp.abs(out2 - ref2)))

    print("KERNEL_OK")
</pallas_src>

<mosaic_0001>
module attributes {stable_mosaic.version = 11 : i64} {
  func.func @_embedding_onehot_kernel(%arg0: i32, %arg1: memref<16x1xi32, #tpu.memory_space<vmem>>, %arg2: memref<64x128xf32, #tpu.memory_space<vmem>>, %arg3: memref<16x128xf32, #tpu.memory_space<vmem>>) attributes {dimension_semantics = [#tpu.dimension_semantics<parallel>], iteration_bounds = array<i64: 1>, scalar_prefetch = 0 : i64, scratch_operands = 0 : i64, tpu.core_type = #tpu.core_type<tc>, window_params = [{transform_indices = @transform_0, window_bounds = array<i64: 16, 1>}, {pipeline_mode = #tpu.pipeline_mode<synchronous>, transform_indices = @transform_1, window_bounds = array<i64: 64, 128>}, {transform_indices = @transform_2, window_bounds = array<i64: 16, 128>}]} {
    %c0 = arith.constant 0 : index
    %c0_0 = arith.constant 0 : index
    %0 = vector.load %arg1[%c0, %c0_0] : memref<16x1xi32, #tpu.memory_space<vmem>>, vector<16x1xi32>
    %c0_i32 = arith.constant 0 : i32
    %c63_i32 = arith.constant 63 : i32
    %1 = vector.broadcast %c0_i32 : i32 to vector<16x1xi32>
    %2 = arith.maxsi %1, %0 : vector<16x1xi32>
    %3 = vector.broadcast %c63_i32 : i32 to vector<16x1xi32>
    %4 = arith.minsi %3, %2 : vector<16x1xi32>
    %5 = tpu.iota {dimensions = array<i32: 1>} : vector<16x64xi32>
    %cst = arith.constant 0.000000e+00 : f32
    %6 = vector.broadcast %cst : f32 to vector<16x128xf32>
    %c0_i32_1 = arith.constant 0 : i32
    %7 = vector.broadcast %c0_i32_1 : i32 to vector<16x1xi32>
    %8 = arith.subi %4, %7 : vector<16x1xi32>
    %9 = vector.broadcast %8 : vector<16x1xi32> to vector<16x64xi32>
    %10 = arith.cmpi eq, %5, %9 : vector<16x64xi32>
    %11 = arith.extui %10 : vector<16x64xi1> to vector<16x64xi32>
    %12 = arith.sitofp %11 : vector<16x64xi32> to vector<16x64xf32>
    %c0_2 = arith.constant 0 : index
    %c0_3 = arith.constant 0 : index
    %13 = vector.load %arg2[%c0_2, %c0_3] : memref<64x128xf32, #tpu.memory_space<vmem>>, vector<64x128xf32>
    %cst_4 = arith.constant dense<0.000000e+00> : vector<16x128xf32>
    %14 = tpu.matmul %12, %13, %cst_4 {dimension_numbers = #tpu.dot_dimension_numbers<[1], [0], [0], [1], [0, 0, 1, 1], [], []>} : vector<16x64xf32>, vector<64x128xf32>, vector<16x128xf32> -> vector<16x128xf32>
    %15 = arith.addf %6, %14 : vector<16x128xf32>
    %cst_5 = arith.constant 11.3137083 : f32
    %16 = vector.broadcast %cst_5 : f32 to vector<16x128xf32>
    %17 = arith.mulf %15, %16 : vector<16x128xf32>
    %c0_6 = arith.constant 0 : index
    %c0_7 = arith.constant 0 : index
    %18 = vector.load %arg3[%c0_6, %c0_7] : memref<16x128xf32, #tpu.memory_space<vmem>>, vector<16x128xf32>
    tpu.vector_store %arg3[%c0_6, %c0_7], %17 {strides = array<i32>} : memref<16x128xf32, #tpu.memory_space<vmem>>, vector<16x128xf32>,
    return
  }
  func.func @transform_0(%arg0: i32) -> (i32, i32) {
    %c0_i32 = arith.constant 0 : i32
    %c0_i32_0 = arith.constant 0 : i32
    return %arg0, %c0_i32 : i32, i32
  }
  func.func @transform_1(%arg0: i32) -> (i32, i32) {
    %c0_i32 = arith.constant 0 : i32
    %c0_i32_0 = arith.constant 0 : i32
    %c0_i32_1 = arith.constant 0 : i32
    return %c0_i32, %c0_i32_0 : i32, i32
  }
  func.func @transform_2(%arg0: i32) -> (i32, i32) {
    %c0_i32 = arith.constant 0 : i32
    %c0_i32_0 = arith.constant 0 : i32
    return %arg0, %c0_i32 : i32, i32
  }
}

</mosaic_0001>

<bundles_post_ra>
// kernel: tpu_custom_call.1
= control target key start
LH: loop header
LB: loop body
LE: loop exit
PB: predicated region body
PF: predicated region fallthrough
CT: control target
= control target key end

     0   :  { %7 = vsyncpa [#allocation3], 0  ;;  %s322_s0 = inlined_call_operand.vmem [shape: s32[16,1], index: 0, kind: input, shape index: {}]   ;;  %s323_s1 = inlined_call_operand.hbm [shape: f32[64,128], index: 1, kind: input, shape index: {}]   ;;  %s324_s2 = inlined_call_operand.hbm [shape: f32[16,128], index: 2, kind: output, shape index: {}]  }
   0x1   :  { %8 = vsyncpa [#allocation4], 0  ;;  %s265_s9 = smov [#allocation2]   ;;  %s217_s13 = scalar_lea.hbm %s323_s1, 1024 }
   0x2   :  { %s16_s10 = sshll.u32 %s265_s9, 4  ;;  %p218_p0 = scmp.ne.s32.totalorder %s323_s1, %s217_s13  ;;  %s17_s10 = int_to_ptr.vmem [resolvable:$true] %s16_s10 }
   0x3   :  { %p221_p1 = scmp.lt.u32.totalorder %s217_s13, %s323_s1 }
   0x5   :  { %p223_p2 = pnand %p221_p1, %p218_p0 }
   0x7   :  { %226 = shalt.err (!%p223_p2)
}
   0x8   :  { %s227_s18 = scalar_lea.vmem %s17_s10, 1024  ;;  %p232_p4 = scmp.lt.s32.totalorder %s17_s10, %s17_s10 }
   0x9   :  { %p228_p3 = scmp.ne.s32.totalorder %s17_s10, %s227_s18  ;;  %p233_p5 = scmp.lt.s32.totalorder %s227_s18, %s227_s18 }
   0xb   :  { %p234_p6 = por %p233_p5, %p232_p4 }
   0xd   :  { %p235_p7 = pnand %p234_p6, %p228_p3 }
   0xf   :  { %238 = shalt.err (!%p235_p7)
}
  0x10   :  { %s266_s19 = smov 128   ;;  %s267_s20 = smov 8  }
  0x11   :  { %22 = dma.hbm_to_vmem [thread:$0]  %s323_s1, 1024, %s17_s10, [#allocation3], %s266_s19, %s266_s19, %s267_s20  }
  0x12   :  { %261 = dma.done.wait [#allocation3], 1024  }
  0x13   :  { %262 = vsyncadd [#allocation3], 4294966272  ;;  %v268_v0 = vmov 0   ;;  %v26_v1 = vld [vmem:[%s322_s0] sm:$0xff]  ;;  %v27_v2 = vld [vmem:[%s322_s0 + $0x8] sm:$0xff]  ;;  %v36_v19 = vlaneseq  ;;  %vm58_vm4 = vcmask 523264  }
  0x14   :  { %216 = vset.pattern.permute.xlu0 %v268_v0  ;;  %v50_v3 = vld [vmem:[#allocation2] sm:$0xff]  ;;  %vm28_vm0 = vcmp.gt.s32.totalorder %v26_v1, 0  ;;  %vm30_vm1 = vcmp.gt.s32.totalorder %v27_v2, 0  ;;  %v51_v4 = vld [vmem:[#allocation2 + $0x8] sm:$0xff]  ;;  %v52_v5 = vld [vmem:[#allocation2 + $0x10] sm:$0xff]  ;;  %v269_v22 = vmov 0.0  }
  0x15   :  { %v53_v6 = vld [vmem:[#allocation2 + $0x18] sm:$0xff]  ;;  %v29_v7 = vsel %vm28_vm0, %v26_v1, 0  ;;  %v31_v8 = vsel %vm30_vm1, %v27_v2, 0  ;;  %v194_v9 = vpack.c.bf16 %v51_v4, %v50_v3  ;;  %v54_v11 = vld [vmem:[#allocation2 + $0x20] sm:$0xff]  ;;  %v55_v12 = vld [vmem:[#allocation2 + $0x28] sm:$0xff]  ;;  %v37_v20 = vand.u32 127, %v36_v19 }
  0x16   :  { %v198_v10 = vpack.c.bf16 %v53_v6, %v52_v5  ;;  %vm32_vm2 = vcmp.lt.s32.totalorder %v29_v7, 63  ;;  %vm34_vm3 = vcmp.lt.s32.totalorder %v31_v8, 63  ;;  %v202_v15 = vpack.c.bf16 %v55_v12, %v54_v11  ;;  %v56_v16 = vld [vmem:[#allocation2 + $0x30] sm:$0xff]  ;;  %v57_v17 = vld [vmem:[#allocation2 + $0x38] sm:$0xff]  ;;  %s270_s0 = smov [#allocation5]  }
  0x17   :  { %v33_v13 = vsel %vm32_vm2, %v29_v7, 63  ;;  %195 = vmatprep.subr.bf16.mxu0 %v194_v9  ;;  %v35_v14 = vsel %vm34_vm3, %v31_v8, 63  ;;  %v206_v18 = vpack.c.bf16 %v57_v17, %v56_v16  ;;  %s149_s1 = sshll.u32 %s270_s0, 4  ;;  %s150_s1 = int_to_ptr.vmem [resolvable:$true] %s149_s1 }
  0x18   :  { %39 = vperm.xlu0 %216, %v33_v13   ;;  %197 = vmatpush3.bf16.msra.mxu0 %v194_v9  ;;  %s239_s27 = scalar_lea.vmem %s150_s1, 256  ;;  %p244_p9 = scmp.lt.s32.totalorder %s150_s1, %s150_s1 }
  0x19   :  { %199 = vmatprep.subr.bf16.mxu0 %v198_v10  ;;  %p240_p8 = scmp.ne.s32.totalorder %s150_s1, %s239_s27  ;;  %p245_p10 = scmp.lt.s32.totalorder %s239_s27, %s239_s27 }
  0x1b   :  { %p246_p11 = por %p245_p10, %p244_p9 }
  0x1c   :  { %42 = vperm.xlu0 %216, %v35_v14   ;;  %201 = vmatpush3.bf16.msra.mxu0 %v198_v10 }
  0x1d   :  { %203 = vmatprep.subr.bf16.mxu0 %v202_v15  ;;  %p247_p12 = pnand %p246_p11, %p240_p8 }
  0x20   :  { %205 = vmatpush3.bf16.msra.mxu0 %v202_v15 }
  0x21   :  { %207 = vmatprep.subr.bf16.mxu0 %v206_v18 }
  0x24   :  { %209 = vmatpush3.bf16.msra.mxu0 %v206_v18 }
  0x97   :  { %v40_v21 = vpop.permute.xlu0 %39 }
  0x98   :  { %vm44_vm5 = vcmp.eq.s32.totalorder %v37_v20, %v40_v21 }
  0x99   :  { %v161_v23 = vsel %vm44_vm5, 1.0, %v269_v22 }
  0x9a   :  { %191 = vmatprep.mubr.msk.f32.mxu0 %vm58_vm4, %v161_v23 }
  0x9b   :  { %v43_v24 = vpop.permute.xlu0 %42 }
  0x9c   :  { %vm45_vm6 = vcmp.eq.s32.totalorder %v37_v20, %v43_v24 }
  0x9d   :  { %v162_v25 = vsel %vm45_vm6, 1.0, %v269_v22 }
  0x9e   :  { %192 = vmatmul.mubr.msk.f32.vlgmr.msra.gmra.mrb[0].mxu0 %vm58_vm4, %v162_v25 }
 0x171   :  { %v193_v26 = vpop.f32.mrb[0].mxu0 }
 0x172   :  { %v141_v27 = vmul.f32 11.313708, %v193_v26  ;;  %v131_v28 = vpop.f32.mrb[1].mxu0 }
 0x173   :  { %v140_v29 = vmul.f32 11.313708, %v131_v28 }
 0x174   :  { %143 = vst [vmem:[#allocation5 + $0x8] sm:$0xff] %v141_v27 }
 0x175   :  { %142 = vst [vmem:[#allocation5] sm:$0xff] %v140_v29 }
 0x176   :  { %250 = shalt.err (!%p247_p12)
}
 0x177   :  { %s251_s30 = scalar_lea.hbm %s324_s2, 256 }
 0x178   :  { %p252_p13 = scmp.ne.s32.totalorder %s324_s2, %s251_s30  ;;  %p255_p0 = scmp.lt.u32.totalorder %s251_s30, %s324_s2 }
 0x17a   :  { %p257_p1 = pnand %p255_p0, %p252_p13 }
 0x17c   :  { %260 = shalt.err (!%p257_p1)
}
 0x17d   :  { %155 = dma.vmem_to_hbm [thread:$0]  %s150_s1, 256, %s324_s2, [#allocation4], %s266_s19, %s266_s19, %s267_s20  }
 0x17e   :  { %263 = dma.done.wait [#allocation4], 256  }
 0x17f   :  { %264 = vsyncadd [#allocation4], 4294967040 }
 0x180   :  { %159 = vsyncpa [#allocation3], 1 }
 0x181   :  { %160 = vsyncpa [#allocation4], 1 }

</bundles_post_ra>
